<compile_context>
chip_gen: v7x
topology: tpu7x:2x2x1
jax: 0.10.0
libtpu: 0.0.40
codegen_flags: <defaults>
</compile_context>

<pallas_src>
import functools
import math

import jax
import jax.numpy as jnp
from jax import lax
from jax.experimental import pallas as pl
from jax.experimental.pallas import tpu as pltpu


# ---------------------------------------------------------------------------
# helpers
# ---------------------------------------------------------------------------
def _round_up(x, m):
    return ((x + m - 1) // m) * m


def _pick_tile(dim, target, align=8):
    """Largest multiple of `align` <= target that divides `dim` (else the full dim)."""
    if dim <= target or dim % align != 0:
        return dim
    t = max(align, (min(target, dim) // align) * align)
    while dim % t != 0:
        t -= align
    return t


def _pad_to(a, shape, dtype):
    a = a.astype(dtype)
    if a.shape == tuple(shape):
        return a
    out = jnp.zeros(shape, dtype)
    return out.at[tuple(slice(0, s) for s in a.shape)].set(a)


# ---------------------------------------------------------------------------
# Pallas kernel: tiled dense projection  out = x @ W + b
#   grid = (M/tm, N/tn, K/tk), f32 accumulator scratch, bf16 MXU operands
# ---------------------------------------------------------------------------
def _dense_kernel(x_ref, w_ref, b_ref, o_ref, acc_ref):
    @pl.when(pl.program_id(2) == 0)
    def _init():
        acc_ref[...] = jnp.zeros(acc_ref.shape, acc_ref.dtype)

    acc_ref[...] += jnp.dot(
        x_ref[...], w_ref[...], preferred_element_type=jnp.float32
    )

    @pl.when(pl.program_id(2) == pl.num_programs(2) - 1)
    def _finalize():
        o_ref[...] = (acc_ref[...] + b_ref[...]).astype(o_ref.dtype)


def dense(x2d, w, b, *, tm=256, tn=256, tk=512, out_dtype=jnp.float32):
    """x2d: (M, K), w: (K, N), b: (N,) -> (M, N) in out_dtype.

    Inputs are zero-padded to tile multiples (zero K-padding is a no-op for the
    matmul); operands are cast to bf16 for the MXU, accumulation stays f32.
    """
    M, K = x2d.shape
    Kw, N = w.shape
    assert K == Kw

    tm = min(tm, _round_up(M, 8))
    tn = min(tn, _round_up(N, 128))
    tk = min(tk, _round_up(K, 128))
    Mp, Np, Kp = _round_up(M, tm), _round_up(N, tn), _round_up(K, tk)

    xb = _pad_to(x2d, (Mp, Kp), jnp.bfloat16)
    wb = _pad_to(w, (Kp, Np), jnp.bfloat16)
    bb = _pad_to(b.reshape(1, N), (1, Np), jnp.float32)

    grid = (Mp // tm, Np // tn, Kp // tk)
    out = pl.pallas_call(
        _dense_kernel,
        out_shape=jax.ShapeDtypeStruct((Mp, Np), out_dtype),
        grid=grid,
        in_specs=[
            pl.BlockSpec((tm, tk), lambda i, j, k: (i, k)),
            pl.BlockSpec((tk, tn), lambda i, j, k: (k, j)),
            pl.BlockSpec((1, tn), lambda i, j, k: (0, j)),
        ],
        out_specs=pl.BlockSpec((tm, tn), lambda i, j, k: (i, j)),
        scratch_shapes=[pltpu.VMEM((tm, tn), jnp.float32)],
        compiler_params=pltpu.CompilerParams(
            dimension_semantics=("parallel", "parallel", "arbitrary")
        ),
        cost_estimate=pl.CostEstimate(
            flops=2 * Mp * Np * Kp,
            transcendentals=0,
            bytes_accessed=Mp * Kp * 2 + Kp * Np * 2 + Np * 4
            + Mp * Np * jnp.dtype(out_dtype).itemsize,
        ),
    )(xb, wb, bb)

    if (Mp, Np) != (M, N):
        out = out[:M, :N]
    return out


# ---------------------------------------------------------------------------
# Pallas kernel: flash-style attention core with KV tiling + online softmax
#   grid = (B, S/tq, S/tkv); KV axis is the (arbitrary) reduction axis.
#   All heads are processed per grid step directly from the packed (B, S, H*Dh)
#   layout (lane-dense blocks, no host-side head transposes).
#   NOTE: the 1/sqrt(Dh) scale is folded into the Q projection weights.
# ---------------------------------------------------------------------------
def _flash_kernel(q_ref, k_ref, v_ref, o_ref, m_sc, l_sc, acc_sc,
                  *, num_heads, head_dim):
    ki = pl.program_id(2)

    @pl.when(ki == 0)
    def _init():
        m_sc[...] = jnp.full(m_sc.shape, -jnp.inf, dtype=m_sc.dtype)
        l_sc[...] = jnp.zeros(l_sc.shape, l_sc.dtype)
        acc_sc[...] = jnp.zeros(acc_sc.shape, acc_sc.dtype)

    # TODO(synk): attention_mask / causal masking / dropout are not implemented.
    for h in range(num_heads):  # unrolled; static lane slices of the packed tiles
        lo, hi = h * head_dim, (h + 1) * head_dim
        q_h = q_ref[0, :, lo:hi]          # (tq,  Dh) bf16
        k_h = k_ref[0, :, lo:hi]          # (tkv, Dh) bf16
        v_h = v_ref[0, :, lo:hi]          # (tkv, Dh) bf16

        # scores: contract the last dims -> K consumed in stored layout (no .T)
        s = lax.dot_general(
            q_h, k_h,
            dimension_numbers=(((1,), (1,)), ((), ())),
            preferred_element_type=jnp.float32,
        )                                  # (tq, tkv) f32

        m_prev = m_sc[h]                   # (tq, 1)
        m_new = jnp.maximum(m_prev, jnp.max(s, axis=-1, keepdims=True))
        alpha = jnp.exp(m_prev - m_new)
        p = jnp.exp(s - m_new)             # f32 softmax math

        l_sc[h] = alpha * l_sc[h] + jnp.sum(p, axis=-1, keepdims=True)
        acc_sc[h] = alpha * acc_sc[h] + lax.dot_general(
            p.astype(v_h.dtype), v_h,      # bf16 MXU operands, f32 accumulation
            dimension_numbers=(((1,), (0,)), ((), ())),
            preferred_element_type=jnp.float32,
        )
        m_sc[h] = m_new

    @pl.when(ki == pl.num_programs(2) - 1)
    def _finalize():
        for h in range(num_heads):
            lo, hi = h * head_dim, (h + 1) * head_dim
            inv_l = pl.reciprocal(l_sc[h], approx=True)   # EUP slot, ~free
            o_ref[0, :, lo:hi] = (acc_sc[h] * inv_l).astype(o_ref.dtype)


def flash_attention(q, k, v, num_heads, *, tq=128, tkv=512,
                    out_dtype=jnp.bfloat16):
    """q, k, v: (B, S, H*Dh) bf16 -> ctx (B, S, H*Dh)."""
    B, S, D = q.shape
    Dh = D // num_heads
    tq = _pick_tile(S, tq, 8)
    tkv = _pick_tile(S, tkv, 8)
    grid = (B, S // tq, S // tkv)

    kernel = functools.partial(_flash_kernel, num_heads=num_heads, head_dim=Dh)
    # NOTE(v5e): consider pipeline_mode=pl.Buffered(3) on the K/V specs to hide
    # DMA latency on the lower-bandwidth generation.
    return pl.pallas_call(
        kernel,
        out_shape=jax.ShapeDtypeStruct((B, S, D), out_dtype),
        grid=grid,
        in_specs=[
            pl.BlockSpec((1, tq, D), lambda b, qi, ki: (b, qi, 0)),
            pl.BlockSpec((1, tkv, D), lambda b, qi, ki: (b, ki, 0)),
            pl.BlockSpec((1, tkv, D), lambda b, qi, ki: (b, ki, 0)),
        ],
        out_specs=pl.BlockSpec((1, tq, D), lambda b, qi, ki: (b, qi, 0)),
        scratch_shapes=[
            pltpu.VMEM((num_heads, tq, 1), jnp.float32),    # running max
            pltpu.VMEM((num_heads, tq, 1), jnp.float32),    # running denom
            pltpu.VMEM((num_heads, tq, Dh), jnp.float32),   # running ctx accum
        ],
        compiler_params=pltpu.CompilerParams(
            dimension_semantics=("parallel", "parallel", "arbitrary")
        ),
        cost_estimate=pl.CostEstimate(
            flops=4 * B * num_heads * S * S * Dh,
            transcendentals=B * num_heads * S * S,
            bytes_accessed=3 * B * S * D * 2
            + B * S * D * jnp.dtype(out_dtype).itemsize,
        ),
    )(q, k, v)


# ---------------------------------------------------------------------------
# Pallas kernel: optional attention probabilities (output_attentions=True only)
# ---------------------------------------------------------------------------
def _probs_kernel(q_ref, k_ref, p_ref, *, num_heads, head_dim):
    for h in range(num_heads):
        lo, hi = h * head_dim, (h + 1) * head_dim
        s = lax.dot_general(
            q_ref[0, :, lo:hi], k_ref[0, :, lo:hi],
            dimension_numbers=(((1,), (1,)), ((), ())),
            preferred_element_type=jnp.float32,
        )                                           # (tq, S)
        m = jnp.max(s, axis=-1, keepdims=True)
        e = jnp.exp(s - m)
        p_ref[0, h] = (e / jnp.sum(e, axis=-1, keepdims=True)).astype(p_ref.dtype)


def attention_probs(q, k, num_heads, *, tq=128):
    """q, k: (B, S, H*Dh) bf16 -> probs (B, H, S, S) f32 (optional / debug path)."""
    B, S, D = q.shape
    Dh = D // num_heads
    tq = _pick_tile(S, tq, 8)
    kernel = functools.partial(_probs_kernel, num_heads=num_heads, head_dim=Dh)
    return pl.pallas_call(
        kernel,
        out_shape=jax.ShapeDtypeStruct((B, num_heads, S, S), jnp.float32),
        grid=(B, S // tq),
        in_specs=[
            pl.BlockSpec((1, tq, D), lambda b, qi: (b, qi, 0)),
            pl.BlockSpec((1, S, D), lambda b, qi: (b, 0, 0)),
        ],
        out_specs=pl.BlockSpec((1, num_heads, tq, S), lambda b, qi: (b, 0, qi, 0)),
        compiler_params=pltpu.CompilerParams(
            dimension_semantics=("parallel", "parallel")
        ),
    )(q, k)


# ---------------------------------------------------------------------------
# The attention module wrapped by AttnWrapper
# ---------------------------------------------------------------------------
class MultiHeadSelfAttention:
    def __init__(self, hidden, num_heads, key, *, tq=128, tkv=512):
        assert hidden % num_heads == 0
        self.hidden = hidden
        self.num_heads = num_heads
        self.head_dim = hidden // num_heads
        self.tq = tq
        self.tkv = tkv

        ks = jax.random.split(key, 8)
        std = 1.0 / math.sqrt(hidden)
        self.wq = jax.random.normal(ks[0], (hidden, hidden), jnp.float32) * std
        self.wk = jax.random.normal(ks[1], (hidden, hidden), jnp.float32) * std
        self.wv = jax.random.normal(ks[2], (hidden, hidden), jnp.float32) * std
        self.wo = jax.random.normal(ks[3], (hidden, hidden), jnp.float32) * std
        self.bq = jax.random.normal(ks[4], (hidden,), jnp.float32) * 0.01
        self.bk = jax.random.normal(ks[5], (hidden,), jnp.float32) * 0.01
        self.bv = jax.random.normal(ks[6], (hidden,), jnp.float32) * 0.01
        self.bo = jax.random.normal(ks[7], (hidden,), jnp.float32) * 0.01

        # Fused QKV projection, with the 1/sqrt(Dh) softmax scale folded into Q.
        scale = 1.0 / math.sqrt(self.head_dim)
        self.w_qkv = jnp.concatenate([self.wq * scale, self.wk, self.wv], axis=1)
        self.b_qkv = jnp.concatenate([self.bq * scale, self.bk, self.bv], axis=0)

    def __call__(self, hidden_states, output_attentions=False):
        B, S, D = hidden_states.shape
        x2 = hidden_states.reshape(B * S, D)

        # Fused QKV projection (tiled MXU kernel, bf16 operands, f32 accumulation).
        qkv = dense(x2, self.w_qkv, self.b_qkv, out_dtype=jnp.bfloat16)
        qkv = qkv.reshape(B, S, 3 * D)
        q = qkv[..., :D]
        k = qkv[..., D:2 * D]
        v = qkv[..., 2 * D:]

        # Flash-style attention core: grid (B, S/tq, S/tkv), online softmax.
        ctx = flash_attention(q, k, v, self.num_heads, tq=self.tq, tkv=self.tkv)

        # Output projection back to f32 activations.
        out = dense(ctx.reshape(B * S, D), self.wo, self.bo,
                    out_dtype=jnp.float32).reshape(B, S, D)

        if output_attentions:
            # Full SxS probabilities only materialized on request (HF-style).
            probs = attention_probs(q, k, self.num_heads, tq=self.tq)
            return (out, probs)
        return (out,)


# ---------------------------------------------------------------------------
# AttnWrapper: faithful port of the PyTorch module (pass-through + capture)
# ---------------------------------------------------------------------------
class AttnWrapper:
    def __init__(self, attn):
        self.attn = attn
        self.activations = None

    def __call__(self, *args, **kwargs):
        output = self.attn(*args, **kwargs)
        self.activations = output[0]
        return output


# ---------------------------------------------------------------------------
# Pure-JAX reference (matching bf16 quantization points) for the correctness check
# ---------------------------------------------------------------------------
def _reference_forward(attn, x):
    B, S, D = x.shape
    H, Dh = attn.num_heads, attn.head_dim
    bf = jnp.bfloat16

    x2 = x.reshape(B * S, D)
    qkv = (jnp.dot(x2.astype(bf), attn.w_qkv.astype(bf),
                   preferred_element_type=jnp.float32) + attn.b_qkv).astype(bf)
    qkv = qkv.reshape(B, S, 3, H, Dh).astype(jnp.float32)
    q, k, v = qkv[:, :, 0], qkv[:, :, 1], qkv[:, :, 2]        # (B, S, H, Dh)

    s = jnp.einsum("bqhd,bkhd->bhqk", q, k)                   # scale folded into Wq
    p = jax.nn.softmax(s, axis=-1)
    ctx = jnp.einsum("bhqk,bkhd->bqhd",
                     p.astype(bf).astype(jnp.float32), v)     # (B, S, H, Dh)
    ctx2 = ctx.reshape(B * S, D).astype(bf)
    out = (jnp.dot(ctx2, attn.wo.astype(bf),
                   preferred_element_type=jnp.float32) + attn.bo).reshape(B, S, D)
    return out, p


if __name__ == "__main__":
    key = jax.random.PRNGKey(0)
    k_x, k_w = jax.random.split(key)

    B, S, D, H = 2, 128, 32, 4
    x = jax.random.normal(k_x, (B, S, D), jnp.float32)

    # small tiles so the flash grid actually has multiple q/kv steps at S=128
    attn = MultiHeadSelfAttention(hidden=D, num_heads=H, key=k_w, tq=64, tkv=32)
    wrapper = AttnWrapper(attn)

    # Default fast path: no attention-probability materialization.
    out_fast = wrapper(x)
    jax.block_until_ready(out_fast)
    assert wrapper.activations.shape == (B, S, D)

    # Optional attention-weights path (HF-style output_attentions=True).
    output = wrapper(x, output_attentions=True)
    jax.block_until_ready(output)
    jax.block_until_ready(wrapper.activations)
    out, probs = output
    assert out.shape == (B, S, D)
    assert probs.shape == (B, H, S, S)
    assert wrapper.activations.shape == (B, S, D)

    # softmax rows sum to 1
    row_sums = jnp.sum(probs, axis=-1)
    assert jnp.allclose(row_sums, jnp.ones_like(row_sums), atol=1e-4)

    # numerics vs a pure-JAX reference with matching bf16 quantization points
    ref_out, ref_probs = _reference_forward(attn, x)
    assert jnp.allclose(out, ref_out, atol=5e-2, rtol=5e-2), \
        float(jnp.max(jnp.abs(out - ref_out)))
    assert jnp.allclose(probs, ref_probs, atol=1e-3, rtol=1e-3)
    # both paths share the same kernels for out
    assert jnp.allclose(out_fast[0], out, atol=1e-6)

    print("KERNEL_OK")
</pallas_src>

<mosaic_0001>
module attributes {stable_mosaic.version = 11 : i64} {
  func.func @_dense_kernel(%arg0: i32, %arg1: i32, %arg2: i32, %arg3: memref<256x128xbf16, #tpu.memory_space<vmem>>, %arg4: memref<128x128xbf16, #tpu.memory_space<vmem>>, %arg5: memref<1x128xf32, #tpu.memory_space<vmem>>, %arg6: memref<256x128xbf16, #tpu.memory_space<vmem>>, %arg7: memref<256x128xf32, #tpu.memory_space<vmem>>) attributes {dimension_semantics = [#tpu.dimension_semantics<parallel>, #tpu.dimension_semantics<parallel>, #tpu.dimension_semantics<arbitrary>], iteration_bounds = array<i64: 1, 1, 1>, scalar_prefetch = 0 : i64, scratch_operands = 1 : i64, tpu.core_type = #tpu.core_type<tc>, window_params = [{transform_indices = @transform_0, window_bounds = array<i64: 256, 128>}, {transform_indices = @transform_1, window_bounds = array<i64: 128, 128>}, {transform_indices = @transform_2, window_bounds = array<i64: 1, 128>}, {transform_indices = @transform_3, window_bounds = array<i64: 256, 128>}]} {
    %c0_i32 = arith.constant 0 : i32
    %0 = arith.cmpi eq, %arg2, %c0_i32 : i32
    %1 = arith.extui %0 : i1 to i32
    %c0_i32_0 = arith.constant 0 : i32
    %2 = arith.cmpi ne, %1, %c0_i32_0 : i32
    scf.if %2 {
      %cst_10 = arith.constant 0.000000e+00 : f32
      %12 = vector.broadcast %cst_10 : f32 to vector<256x128xf32>
      %c0_11 = arith.constant 0 : index
      %c0_12 = arith.constant 0 : index
      %13 = vector.load %arg7[%c0_11, %c0_12] : memref<256x128xf32, #tpu.memory_space<vmem>>, vector<256x128xf32>
      tpu.vector_store %arg7[%c0_11, %c0_12], %12 {strides = array<i32>} : memref<256x128xf32, #tpu.memory_space<vmem>>, vector<256x128xf32>,
    } else {
    }
    %c0 = arith.constant 0 : index
    %c0_1 = arith.constant 0 : index
    %3 = vector.load %arg7[%c0, %c0_1] : memref<256x128xf32, #tpu.memory_space<vmem>>, vector<256x128xf32>
    %c0_2 = arith.constant 0 : index
    %c0_3 = arith.constant 0 : index
    %4 = vector.load %arg3[%c0_2, %c0_3] : memref<256x128xbf16, #tpu.memory_space<vmem>>, vector<256x128xbf16>
    %c0_4 = arith.constant 0 : index
    %c0_5 = arith.constant 0 : index
    %5 = vector.load %arg4[%c0_4, %c0_5] : memref<128x128xbf16, #tpu.memory_space<vmem>>, vector<128x128xbf16>
    %cst = arith.constant dense<0.000000e+00> : vector<256x128xf32>
    %6 = tpu.matmul %4, %5, %cst {dimension_numbers = #tpu.dot_dimension_numbers<[1], [0], [0], [1], [0, 0, 1, 1], [], []>} : vector<256x128xbf16>, vector<128x128xbf16>, vector<256x128xf32> -> vector<256x128xf32>
    %7 = arith.addf %3, %6 : vector<256x128xf32>
    %c0_6 = arith.constant 0 : index
    %c0_7 = arith.constant 0 : index
    %8 = vector.load %arg7[%c0_6, %c0_7] : memref<256x128xf32, #tpu.memory_space<vmem>>, vector<256x128xf32>
    tpu.vector_store %arg7[%c0_6, %c0_7], %7 {strides = array<i32>} : memref<256x128xf32, #tpu.memory_space<vmem>>, vector<256x128xf32>,
    %c0_i32_8 = arith.constant 0 : i32
    %9 = arith.cmpi eq, %arg2, %c0_i32_8 : i32
    %10 = arith.extui %9 : i1 to i32
    %c0_i32_9 = arith.constant 0 : i32
    %11 = arith.cmpi ne, %10, %c0_i32_9 : i32
    scf.if %11 {
      %c0_10 = arith.constant 0 : index
      %c0_11 = arith.constant 0 : index
      %12 = vector.load %arg7[%c0_10, %c0_11] : memref<256x128xf32, #tpu.memory_space<vmem>>, vector<256x128xf32>
      %c0_12 = arith.constant 0 : index
      %c0_13 = arith.constant 0 : index
      %13 = vector.load %arg5[%c0_12, %c0_13] : memref<1x128xf32, #tpu.memory_space<vmem>>, vector<1x128xf32>
      %14 = vector.broadcast %13 : vector<1x128xf32> to vector<256x128xf32>
      %15 = arith.addf %12, %14 : vector<256x128xf32>
      %16 = arith.truncf %15 : vector<256x128xf32> to vector<256x128xbf16>
      %c0_14 = arith.constant 0 : index
      %c0_15 = arith.constant 0 : index
      %17 = vector.load %arg6[%c0_14, %c0_15] : memref<256x128xbf16, #tpu.memory_space<vmem>>, vector<256x128xbf16>
      tpu.vector_store %arg6[%c0_14, %c0_15], %16 {strides = array<i32>} : memref<256x128xbf16, #tpu.memory_space<vmem>>, vector<256x128xbf16>,
    } else {
    }
    return
  }
  func.func @transform_0(%arg0: i32, %arg1: i32, %arg2: i32) -> (i32, i32) {
    %c0_i32 = arith.constant 0 : i32
    return %arg0, %arg2 : i32, i32
  }
  func.func @transform_1(%arg0: i32, %arg1: i32, %arg2: i32) -> (i32, i32) {
    %c0_i32 = arith.constant 0 : i32
    return %arg2, %arg1 : i32, i32
  }
  func.func @transform_2(%arg0: i32, %arg1: i32, %arg2: i32) -> (i32, i32) {
    %c0_i32 = arith.constant 0 : i32
    %c0_i32_0 = arith.constant 0 : i32
    return %c0_i32, %arg1 : i32, i32
  }
  func.func @transform_3(%arg0: i32, %arg1: i32, %arg2: i32) -> (i32, i32) {
    %c0_i32 = arith.constant 0 : i32
    return %arg0, %arg1 : i32, i32
  }
}

</mosaic_0001>

<bundles_post_ra>
// kernel: tpu_custom_call.1
= control target key start
LH: loop header
LB: loop body
LE: loop exit
PB: predicated region body
PF: predicated region fallthrough
CT: control target
= control target key end

     0   :  { %8 = vsyncpa [#allocation4], 0  ;;  %s1261_s0 = inlined_call_operand.hbm [shape: bf16[256,128], index: 0, kind: input, shape index: {}]   ;;  %s1262_s1 = inlined_call_operand.hbm [shape: bf16[128,128], index: 1, kind: input, shape index: {}]   ;;  %s1263_s2 = inlined_call_operand.vmem [shape: f32[1,128], index: 2, kind: input, shape index: {}]   ;;  %s1264_s3 = inlined_call_operand.hbm [shape: bf16[256,128], index: 3, kind: output, shape index: {}]  }
   0x1   :  { %9 = vsyncpa [#allocation7], 0 }
   0x2   :  { %10 = vsyncpa [#allocation5], 0  ;;  %s1154_s12 = smov [#allocation3]   ;;  %s1082_s16 = scalar_lea.hbm %s1261_s0, 2048 }
   0x3   :  { %s16_s13 = sshll.u32 %s1154_s12, 4  ;;  %p1083_p0 = scmp.ne.s32.totalorder %s1261_s0, %s1082_s16  ;;  %s17_s13 = int_to_ptr.vmem [resolvable:$true] %s16_s13 }
   0x4   :  { %p1086_p1 = scmp.lt.u32.totalorder %s1082_s16, %s1261_s0 }
   0x6   :  { %p1088_p2 = pnand %p1086_p1, %p1083_p0 }
   0x8   :  { %1091 = shalt.err (!%p1088_p2)
}
   0x9   :  { %s1092_s21 = scalar_lea.vmem %s17_s13, 2048  ;;  %p1097_p4 = scmp.lt.s32.totalorder %s17_s13, %s17_s13 }
   0xa   :  { %p1093_p3 = scmp.ne.s32.totalorder %s17_s13, %s1092_s21  ;;  %p1098_p5 = scmp.lt.s32.totalorder %s1092_s21, %s1092_s21 }
   0xc   :  { %p1099_p6 = por %p1098_p5, %p1097_p4 }
   0xe   :  { %p1100_p7 = pnand %p1099_p6, %p1093_p3 }
  0x10   :  { %1103 = shalt.err (!%p1100_p7)
}
  0x11   :  { %s1155_s22 = smov 64   ;;  %s1156_s23 = smov 4  }
  0x12   :  { %22 = dma.hbm_to_vmem [thread:$0]  %s1261_s0, 2048, %s17_s13, [#allocation4], %s1155_s22, %s1155_s22, %s1156_s23  }
  0x13   :  { %s1157_s26 = smov [#allocation6]   ;;  %s1104_s30 = scalar_lea.hbm %s1262_s1, 1024 }
  0x14   :  { %s28_s27 = sshll.u32 %s1157_s26, 4  ;;  %p1105_p8 = scmp.ne.s32.totalorder %s1262_s1, %s1104_s30  ;;  %s29_s27 = int_to_ptr.vmem [resolvable:$true] %s28_s27 }
  0x15   :  { %p1108_p9 = scmp.lt.u32.totalorder %s1104_s30, %s1262_s1 }
  0x17   :  { %p1110_p10 = pnand %p1108_p9, %p1105_p8 }
  0x19   :  { %1113 = shalt.err (!%p1110_p10)
}
  0x1a   :  { %s1114_s8 = scalar_lea.vmem %s29_s27, 1024  ;;  %p1119_p12 = scmp.lt.s32.totalorder %s29_s27, %s29_s27 }
  0x1b   :  { %p1115_p11 = scmp.ne.s32.totalorder %s29_s27, %s1114_s8  ;;  %p1120_p13 = scmp.lt.s32.totalorder %s1114_s8, %s1114_s8 }
  0x1d   :  { %p1121_p0 = por %p1120_p13, %p1119_p12 }
  0x1f   :  { %p1122_p1 = pnand %p1121_p0, %p1115_p11 }
  0x21   :  { %1125 = shalt.err (!%p1122_p1)
}
  0x22   :  { %34 = dma.hbm_to_vmem [thread:$0]  %s1262_s1, 1024, %s29_s27, [#allocation7], %s1155_s22, %s1155_s22, %s1156_s23  }
  0x23   :  { %1148 = dma.done.wait [#allocation4], 2048  }
  0x24   :  { %1149 = vsyncadd [#allocation4], 4294965248 }
  0x25   :  { %1150 = dma.done.wait [#allocation7], 1024  }
  0x26   :  { %1151 = vsyncadd [#allocation7], 4294966272  ;;  %v1058_v0 = vld [vmem:[#allocation6] sm:$0xff]   ;;  %v1059_v1 = vld [vmem:[#allocation6 + $0x8] sm:$0xff]  }
  0x27   :  { %989 = vmatprep.subr.bf16.mxu0 %v1058_v0  ;;  %1037 = vmatprep.subr.bf16.mxu1 %v1058_v0  ;;  %v1060_v2 = vld [vmem:[#allocation6 + $0x10] sm:$0xff]   ;;  %v1061_v3 = vld [vmem:[#allocation6 + $0x18] sm:$0xff]   ;;  %v1066_v4 = vld [vmem:[#allocation3] sm:$0xff]  }
  0x28   :  { %990 = vmatpush3.bf16.msra.mxu0 %v1058_v0  ;;  %1045 = vmatpush3.bf16.msra.mxu1 %v1058_v0  ;;  %v1067_v5 = vld [vmem:[#allocation3 + $0x40] sm:$0xff]   ;;  %v1063_v7 = vld [vmem:[#allocation6 + $0x28] sm:$0xff]   ;;  %v1064_v8 = vld [vmem:[#allocation6 + $0x30] sm:$0xff]  }
  0x29   :  { %991 = vmatprep.subr.bf16.mxu0 %v1059_v1  ;;  %1038 = vmatprep.subr.bf16.mxu1 %v1059_v1  ;;  %v1062_v6 = vld [vmem:[#allocation6 + $0x20] sm:$0xff]   ;;  %v1065_v9 = vld [vmem:[#allocation6 + $0x38] sm:$0xff]   ;;  %v1068_v10 = vld [vmem:[#allocation3 + $0x8] sm:$0xff]  }
  0x2a   :  { %1005 = vmatprep.mubr.bf16.mxu0 %v1066_v4  ;;  %1021 = vmatprep.mubr.bf16.mxu1 %v1067_v5  ;;  %v1069_v11 = vld [vmem:[#allocation3 + $0x48] sm:$0xff]   ;;  %v1070_v12 = vld [vmem:[#allocation3 + $0x10] sm:$0xff]   ;;  %v1072_v14 = vld [vmem:[#allocation3 + $0x18] sm:$0xff]  }
  0x2b   :  { %v1071_v13 = vld [vmem:[#allocation3 + $0x50] sm:$0xff]   ;;  %v1073_v15 = vld [vmem:[#allocation3 + $0x58] sm:$0xff]   ;;  %v1074_v16 = vld [vmem:[#allocation3 + $0x20] sm:$0xff]  }
  0x2c   :  { %992 = vmatpush3.bf16.msra.mxu0 %v1059_v1  ;;  %1046 = vmatpush3.bf16.msra.mxu1 %v1059_v1  ;;  %v1075_v17 = vld [vmem:[#allocation3 + $0x60] sm:$0xff]   ;;  %v1076_v18 = vld [vmem:[#allocation3 + $0x28] sm:$0xff]   ;;  %v1078_v20 = vld [vmem:[#allocation3 + $0x30] sm:$0xff]  }
  0x2d   :  { %993 = vmatprep.subr.bf16.mxu0 %v1060_v2  ;;  %1039 = vmatprep.subr.bf16.mxu1 %v1060_v2  ;;  %v1077_v19 = vld [vmem:[#allocation3 + $0x68] sm:$0xff]   ;;  %v1079_v21 = vld [vmem:[#allocation3 + $0x70] sm:$0xff]   ;;  %v1080_v22 = vld [vmem:[#allocation3 + $0x38] sm:$0xff]  }
  0x2e   :  { %v1081_v23 = vld [vmem:[#allocation3 + $0x78] sm:$0xff]   ;;  %v1212_v25 = vld [vmem:[%s1263_s2] ss:$0 sm:$0xff]  ;;  %s1158_s2 = smov [#allocation8]  }
  0x2f   :  { %s768_s11 = sshll.u32 %s1158_s2, 4  ;;  %s769_s11 = int_to_ptr.vmem [resolvable:$true] %s768_s11 }
  0x30   :  { %994 = vmatpush3.bf16.msra.mxu0 %v1060_v2  ;;  %1047 = vmatpush3.bf16.msra.mxu1 %v1060_v2  ;;  %s1126_s12 = scalar_lea.vmem %s769_s11, 2048  ;;  %p1131_p3 = scmp.lt.s32.totalorder %s769_s11, %s769_s11 }
  0x31   :  { %995 = vmatprep.subr.bf16.mxu0 %v1061_v3  ;;  %1040 = vmatprep.subr.bf16.mxu1 %v1061_v3  ;;  %p1127_p2 = scmp.ne.s32.totalorder %s769_s11, %s1126_s12  ;;  %p1132_p4 = scmp.lt.s32.totalorder %s1126_s12, %s1126_s12 }
  0x33   :  { %p1133_p5 = por %p1132_p4, %p1131_p3 }
  0x34   :  { %996 = vmatpush3.bf16.msra.mxu0 %v1061_v3  ;;  %1048 = vmatpush3.bf16.msra.mxu1 %v1061_v3 }
  0x35   :  { %997 = vmatprep.subr.bf16.mxu0 %v1062_v6  ;;  %1041 = vmatprep.subr.bf16.mxu1 %v1062_v6  ;;  %p1134_p6 = pnand %p1133_p5, %p1127_p2 }
  0x38   :  { %998 = vmatpush3.bf16.msra.mxu0 %v1062_v6  ;;  %1049 = vmatpush3.bf16.msra.mxu1 %v1062_v6 }
  0x39   :  { %999 = vmatprep.subr.bf16.mxu0 %v1063_v7  ;;  %1042 = vmatprep.subr.bf16.mxu1 %v1063_v7 }
  0x3c   :  { %1000 = vmatpush3.bf16.msra.mxu0 %v1063_v7  ;;  %1050 = vmatpush3.bf16.msra.mxu1 %v1063_v7 }
  0x3d   :  { %1001 = vmatprep.subr.bf16.mxu0 %v1064_v8  ;;  %1043 = vmatprep.subr.bf16.mxu1 %v1064_v8 }
  0x40   :  { %1002 = vmatpush3.bf16.msra.mxu0 %v1064_v8  ;;  %1051 = vmatpush3.bf16.msra.mxu1 %v1064_v8 }
  0x41   :  { %1003 = vmatprep.subr.bf16.mxu0 %v1065_v9  ;;  %1044 = vmatprep.subr.bf16.mxu1 %v1065_v9 }
  0x44   :  { %1004 = vmatpush3.bf16.msra.mxu0 %v1065_v9  ;;  %1052 = vmatpush3.bf16.msra.mxu1 %v1065_v9 }
  0x47   :  { %1006 = vmatmul.mubr.bf16.vlgmr.msra.gmra.mrb[0].mxu0 %v1068_v10  ;;  %1022 = vmatmul.mubr.bf16.vlgmr.msra.gmra.mrb[0].mxu1 %v1069_v11 }
  0x48   :  { %1009 = vmatprep.mubr.bf16.mxu0 %v1070_v12  ;;  %1025 = vmatprep.mubr.bf16.mxu1 %v1071_v13 }
  0x4f   :  { %1010 = vmatmul.mubr.bf16.gmra.mrb[4].mxu0 %v1072_v14  ;;  %1026 = vmatmul.mubr.bf16.gmra.mrb[4].mxu1 %v1073_v15 }
  0x50   :  { %1013 = vmatprep.mubr.bf16.mxu0 %v1074_v16  ;;  %1029 = vmatprep.mubr.bf16.mxu1 %v1075_v17 }
  0x57   :  { %1014 = vmatmul.mubr.bf16.gmra.mrb[8].mxu0 %v1076_v18  ;;  %1030 = vmatmul.mubr.bf16.gmra.mrb[8].mxu1 %v1077_v19 }
  0x58   :  { %1017 = vmatprep.mubr.bf16.mxu0 %v1078_v20  ;;  %1033 = vmatprep.mubr.bf16.mxu1 %v1079_v21 }
  0x5f   :  { %1018 = vmatmul.mubr.bf16.gmra.mrb[12].mxu0 %v1080_v22  ;;  %1034 = vmatmul.mubr.bf16.gmra.mrb[12].mxu1 %v1081_v23 }
 0x11a   :  { %v1007_v24 = vpop.f32.mrb[0].mxu0  ;;  %v1023_v26 = vpop.f32.mrb[0].mxu1 }
 0x11b   :  { %v338_v27 = vpop.f32.mrb[1].mxu0  ;;  %v402_v28 = vpop.f32.mrb[1].mxu1  ;;  %v573_v31 = vadd.f32 %v1007_v24, %v1212_v25  ;;  %v589_v32 = vadd.f32 %v1023_v26, %v1212_v25 }
 0x11c   :  { %v1008_v29 = vpop.f32.mrb[2].mxu0  ;;  %v1024_v30 = vpop.f32.mrb[2].mxu1  ;;  %v571_v37 = vadd.f32 %v1212_v25, %v338_v27  ;;  %v587_v38 = vadd.f32 %v1212_v25, %v402_v28 }
 0x11d   :  { %v574_v33 = vadd.f32 %v1008_v29, %v1212_v25  ;;  %v590_v34 = vadd.f32 %v1024_v30, %v1212_v25  ;;  %v341_v35 = vpop.f32.mrb[3].mxu0  ;;  %v405_v36 = vpop.f32.mrb[3].mxu1 }
 0x11e   :  { %v572_v39 = vadd.f32 %v1212_v25, %v341_v35  ;;  %v588_v40 = vadd.f32 %v1212_v25, %v405_v36 }
 0x11f   :  { %v878_v41 = vpack.c.bf16 %v574_v33, %v573_v31  ;;  %v918_v42 = vpack.c.bf16 %v590_v34, %v589_v32 }
 0x120   :  { %v873_v43 = vpack.c.bf16 %v572_v39, %v571_v37  ;;  %v913_v44 = vpack.c.bf16 %v588_v40, %v587_v38 }
 0x121   :  { %950 = vst [vmem:[#allocation8 + $0x8] sm:$0xff] %v878_v41   ;;  %958 = vst [vmem:[#allocation8 + $0x48] sm:$0xff] %v918_v42  }
 0x122   :  { %874 = vst [vmem:[#allocation8] sm:$0xff] %v873_v43   ;;  %957 = vst [vmem:[#allocation8 + $0x40] sm:$0xff] %v913_v44   ;;  %v1011_v45 = vpop.f32.mrb[4].mxu0  ;;  %v1027_v46 = vpop.f32.mrb[4].mxu1 }
 0x123   :  { %v354_v47 = vpop.f32.mrb[5].mxu0  ;;  %v418_v48 = vpop.f32.mrb[5].mxu1  ;;  %v577_v51 = vadd.f32 %v1011_v45, %v1212_v25  ;;  %v593_v52 = vadd.f32 %v1027_v46, %v1212_v25 }
 0x124   :  { %v1012_v49 = vpop.f32.mrb[6].mxu0  ;;  %v1028_v50 = vpop.f32.mrb[6].mxu1  ;;  %v575_v57 = vadd.f32 %v1212_v25, %v354_v47  ;;  %v591_v58 = vadd.f32 %v1212_v25, %v418_v48 }
 0x125   :  { %v578_v53 = vadd.f32 %v1012_v49, %v1212_v25  ;;  %v594_v54 = vadd.f32 %v1028_v50, %v1212_v25  ;;  %v357_v55 = vpop.f32.mrb[7].mxu0  ;;  %v421_v56 = vpop.f32.mrb[7].mxu1 }
 0x126   :  { %v576_v59 = vadd.f32 %v1212_v25, %v357_v55  ;;  %v592_v60 = vadd.f32 %v1212_v25, %v421_v56 }
 0x127   :  { %v888_v61 = vpack.c.bf16 %v578_v53, %v577_v51  ;;  %v928_v62 = vpack.c.bf16 %v594_v54, %v593_v52 }
 0x128   :  { %v883_v63 = vpack.c.bf16 %v576_v59, %v575_v57  ;;  %v923_v0 = vpack.c.bf16 %v592_v60, %v591_v58 }
 0x129   :  { %952 = vst [vmem:[#allocation8 + $0x18] sm:$0xff] %v888_v61   ;;  %960 = vst [vmem:[#allocation8 + $0x58] sm:$0xff] %v928_v62  }
 0x12a   :  { %951 = vst [vmem:[#allocation8 + $0x10] sm:$0xff] %v883_v63   ;;  %959 = vst [vmem:[#allocation8 + $0x50] sm:$0xff] %v923_v0   ;;  %v1015_v1 = vpop.f32.mrb[8].mxu0  ;;  %v1031_v2 = vpop.f32.mrb[8].mxu1 }
 0x12b   :  { %v370_v3 = vpop.f32.mrb[9].mxu0  ;;  %v434_v4 = vpop.f32.mrb[9].mxu1  ;;  %v581_v7 = vadd.f32 %v1015_v1, %v1212_v25  ;;  %v597_v8 = vadd.f32 %v1031_v2, %v1212_v25 }
 0x12c   :  { %v1016_v5 = vpop.f32.mrb[10].mxu0  ;;  %v1032_v6 = vpop.f32.mrb[10].mxu1  ;;  %v579_v13 = vadd.f32 %v1212_v25, %v370_v3  ;;  %v595_v14 = vadd.f32 %v1212_v25, %v434_v4 }
 0x12d   :  { %v582_v9 = vadd.f32 %v1016_v5, %v1212_v25  ;;  %v598_v10 = vadd.f32 %v1032_v6, %v1212_v25  ;;  %v373_v11 = vpop.f32.mrb[11].mxu0  ;;  %v437_v12 = vpop.f32.mrb[11].mxu1 }
 0x12e   :  { %v580_v15 = vadd.f32 %v1212_v25, %v373_v11  ;;  %v596_v16 = vadd.f32 %v1212_v25, %v437_v12 }
 0x12f   :  { %v898_v17 = vpack.c.bf16 %v582_v9, %v581_v7  ;;  %v938_v18 = vpack.c.bf16 %v598_v10, %v597_v8 }
 0x130   :  { %v893_v19 = vpack.c.bf16 %v580_v15, %v579_v13  ;;  %v933_v20 = vpack.c.bf16 %v596_v16, %v595_v14 }
 0x131   :  { %954 = vst [vmem:[#allocation8 + $0x28] sm:$0xff] %v898_v17   ;;  %962 = vst [vmem:[#allocation8 + $0x68] sm:$0xff] %v938_v18  }
 0x132   :  { %953 = vst [vmem:[#allocation8 + $0x20] sm:$0xff] %v893_v19   ;;  %961 = vst [vmem:[#allocation8 + $0x60] sm:$0xff] %v933_v20   ;;  %v1019_v21 = vpop.f32.mrb[12].mxu0  ;;  %v1035_v22 = vpop.f32.mrb[12].mxu1 }
 0x133   :  { %v386_v23 = vpop.f32.mrb[13].mxu0  ;;  %v450_v24 = vpop.f32.mrb[13].mxu1  ;;  %v585_v28 = vadd.f32 %v1019_v21, %v1212_v25  ;;  %v601_v29 = vadd.f32 %v1035_v22, %v1212_v25 }
 0x134   :  { %v1020_v26 = vpop.f32.mrb[14].mxu0  ;;  %v1036_v27 = vpop.f32.mrb[14].mxu1  ;;  %v583_v34 = vadd.f32 %v1212_v25, %v386_v23  ;;  %v599_v35 = vadd.f32 %v1212_v25, %v450_v24 }
 0x135   :  { %v586_v30 = vadd.f32 %v1020_v26, %v1212_v25  ;;  %v602_v31 = vadd.f32 %v1036_v27, %v1212_v25  ;;  %v389_v32 = vpop.f32.mrb[15].mxu0  ;;  %v453_v33 = vpop.f32.mrb[15].mxu1 }
 0x136   :  { %v584_v36 = vadd.f32 %v1212_v25, %v389_v32  ;;  %v600_v37 = vadd.f32 %v1212_v25, %v453_v33 }
 0x137   :  { %v908_v38 = vpack.c.bf16 %v586_v30, %v585_v28  ;;  %v948_v39 = vpack.c.bf16 %v602_v31, %v601_v29 }
 0x138   :  { %v903_v40 = vpack.c.bf16 %v584_v36, %v583_v34  ;;  %v943_v41 = vpack.c.bf16 %v600_v37, %v599_v35 }
 0x139   :  { %956 = vst [vmem:[#allocation8 + $0x38] sm:$0xff] %v908_v38   ;;  %964 = vst [vmem:[#allocation8 + $0x78] sm:$0xff] %v948_v39  }
 0x13a   :  { %955 = vst [vmem:[#allocation8 + $0x30] sm:$0xff] %v903_v40   ;;  %963 = vst [vmem:[#allocation8 + $0x70] sm:$0xff] %v943_v41  }
 0x13b   :  { %1137 = shalt.err (!%p1134_p6)
}
 0x13c   :  { %s1138_s15 = scalar_lea.hbm %s1264_s3, 2048 }
 0x13d   :  { %p1139_p7 = scmp.ne.s32.totalorder %s1264_s3, %s1138_s15  ;;  %p1142_p8 = scmp.lt.u32.totalorder %s1138_s15, %s1264_s3 }
 0x13f   :  { %p1144_p9 = pnand %p1142_p8, %p1139_p7 }
 0x141   :  { %1147 = shalt.err (!%p1144_p9)
}
 0x142   :  { %774 = dma.vmem_to_hbm [thread:$0]  %s769_s11, 2048, %s1264_s3, [#allocation5], %s1155_s22, %s1155_s22, %s1156_s23  }
 0x143   :  { %1152 = dma.done.wait [#allocation5], 2048  }
 0x144   :  { %1153 = vsyncadd [#allocation5], 4294965248 }
 0x145   :  { %778 = vsyncpa [#allocation4], 1 }
 0x146   :  { %779 = vsyncpa [#allocation7], 1 }
 0x147   :  { %780 = vsyncpa [#allocation5], 1 }

</bundles_post_ra>
